<compile_context>
chip_gen: v6e
topology: v6e:2x2x1
jax: 0.10.0
libtpu: 0.0.40
codegen_flags: <defaults>
</compile_context>

<pallas_src>
import functools

import jax
import jax.numpy as jnp
from jax.experimental import pallas as pl
from jax.experimental.pallas import tpu as pltpu

LN_EPS = 1e-5  # nn.LayerNorm default


def _round_up(n, m):
    return ((n + m - 1) // m) * m


def _layernorm_f32(x, one_pass):
    """LayerNorm (no affine; gamma/beta are folded into W/b) on f32 rows."""
    mean = jnp.mean(x, axis=-1, keepdims=True)
    if one_pass:
        var = jnp.mean(x * x, axis=-1, keepdims=True) - mean * mean
        xc = x - mean
    else:
        xc = x - mean
        var = jnp.mean(xc * xc, axis=-1, keepdims=True)
    return xc * jax.lax.rsqrt(var + LN_EPS)


def _prenorm_kernel(x_ref, w_ref, b_ref, o_ref, *scratch, one_pass, cache_xhat):
    """out[i, j] = LayerNorm_noaffine(x[i]) @ W'[:, j] + b'[j] (affine folded)."""
    w = w_ref[...]                                   # (D, col_tile), compute dtype
    if cache_xhat:
        # Multiple column blocks: normalize once per row tile, reuse across j.
        xhat_ref, = scratch
        @pl.when(pl.program_id(1) == 0)
        def _():
            xh = _layernorm_f32(x_ref[...].astype(jnp.float32), one_pass)
            xhat_ref[...] = xh.astype(xhat_ref.dtype)
        xhat = xhat_ref[...]
    else:
        xhat = _layernorm_f32(x_ref[...].astype(jnp.float32), one_pass)
        xhat = xhat.astype(w.dtype)
    out = jnp.dot(xhat, w, preferred_element_type=jnp.float32)   # MXU, f32 acc
    out = out + b_ref[...].astype(jnp.float32)                   # folded bias
    o_ref[...] = out.astype(o_ref.dtype)


def _vmem_budget_bytes():
    """Chip-aware VMEM budget with headroom for Mosaic internal scratch."""
    phys = 64 << 20                       # conservative: v7x per-TC physical
    try:
        info = pltpu.get_tpu_info()
        phys = int(getattr(info, "vmem_capacity_bytes", phys)) or phys
    except Exception:
        pass
    # v7x (64 MiB): ~52 MiB.  v5e/v6e (128 MiB): capped at 100 MiB.
    return int(min(phys - (12 << 20), 100 << 20))


def _pick_tiles(N, D, D_out_p0, row_tile_req, sublane, isz, wsz, osz, budget):
    """Return (row_tile, col_tile, weight_resident)."""
    misc = 2 << 20  # slack for Mosaic internal scratch / vreg spill
    rt = max(sublane, (int(row_tile_req) // sublane) * sublane)
    rt = min(rt, _round_up(N, sublane))
    while True:
        # Path A: whole folded weight resident, single-buffered (Buffered(1)).
        need_res = (2 * rt * D * isz            # x, double-buffered
                    + D * D_out_p0 * wsz        # weight, single buffer
                    + 8 * D_out_p0 * 4          # bias
                    + 2 * rt * D_out_p0 * osz   # out, double-buffered
                    + rt * D * 4                # f32 LN intermediates
                    + rt * D_out_p0 * 4         # f32 accumulator
                    + misc)
        if need_res <= budget:
            return rt, D_out_p0, True
        # Path B: stream the weight in column tiles (double-buffered DMA).
        fixed = 2 * rt * D * isz + rt * D * wsz + rt * D * 4 + misc
        per_col = 2 * D * wsz + 2 * 8 * 4 + 2 * rt * osz + rt * 4
        ct = ((budget - fixed) // per_col) // 128 * 128 if budget > fixed else 0
        ct = min(int(ct), D_out_p0)
        if ct >= 128:
            return rt, ct, False
        if rt <= sublane:
            return rt, 128, False     # last resort
        rt = max(sublane, rt // 2)


def prenorm_linear(x, gamma, beta, w, wb, *, row_tile=512, compute_dtype=None,
                   _force_col_tile=None):
    """x: [B, S, D] -> [B, S, D_out]; LayerNorm over D, then Linear(D, D_out)."""
    B, S, D = x.shape
    D_out, D_in = w.shape
    assert D_in == D
    N = B * S

    # MXU-native dtype for the matmul; LN stats / accumulation stay f32.
    if compute_dtype is None:
        compute_dtype = jnp.bfloat16 if x.dtype == jnp.bfloat16 else x.dtype
    compute_dtype = jnp.dtype(compute_dtype)

    isz = jnp.dtype(x.dtype).itemsize
    wsz = compute_dtype.itemsize
    osz = isz
    sublane = 16 if isz == 2 else 8

    D_out_p0 = _round_up(D_out, 128)           # lane-dense output stores
    budget = _vmem_budget_bytes()
    rt, col_tile, resident = _pick_tiles(N, D, D_out_p0, row_tile, sublane,
                                         isz, wsz, osz, budget)
    if _force_col_tile is not None:            # test hook: force streaming path
        col_tile = max(128, _round_up(min(int(_force_col_tile), D_out_p0), 128))
        resident = False
    D_out_p = D_out_p0 if resident else _round_up(D_out_p0, col_tile)
    n_rows = pl.cdiv(N, rt)
    n_cols = D_out_p // col_tile

    # Fold LayerNorm affine into the Linear (one-time precompute, off hot path):
    #   (xhat*gamma + beta) @ W.T + wb == xhat @ (W*gamma).T + (beta @ W.T + wb)
    w_f32 = w.astype(jnp.float32)
    w_t = (w_f32 * gamma.astype(jnp.float32)[None, :]).T               # (D, D_out)
    b_f = beta.astype(jnp.float32) @ w_f32.T + wb.astype(jnp.float32)  # (D_out,)
    if D_out_p != D_out:
        w_t = jnp.pad(w_t, ((0, 0), (0, D_out_p - D_out)))
        b_f = jnp.pad(b_f, (0, D_out_p - D_out))
    w_t = w_t.astype(compute_dtype)
    b_f = b_f.reshape(1, D_out_p)                                      # f32

    # No row padding: grid rows use cdiv and Pallas masks OOB writes of the
    # ragged last block (padded garbage rows never reach HBM).
    x2 = x.reshape(N, D)

    one_pass = D_out_p <= D            # LN micro-opt only when not MXU-dominated
    cache_xhat = n_cols > 1
    kernel = functools.partial(_prenorm_kernel, one_pass=one_pass,
                               cache_xhat=cache_xhat)
    scratch = [pltpu.VMEM((rt, D), compute_dtype)] if cache_xhat else []

    cost = pl.CostEstimate(
        flops=2 * N * D * D_out_p,
        transcendentals=N,
        bytes_accessed=(N * D * isz
                        + (n_rows if n_cols > 1 else 1) * D * D_out_p * wsz
                        + N * D_out_p * osz),
    )

    def build(use_buffered):
        if resident and use_buffered:
            # Constant index map -> never re-fetched; single-buffer to halve the
            # resident-weight VMEM footprint.
            w_spec = pl.BlockSpec((D, col_tile), lambda i, j: (0, j),
                                  pipeline_mode=pl.Buffered(1))
            b_spec = pl.BlockSpec((1, col_tile), lambda i, j: (0, j),
                                  pipeline_mode=pl.Buffered(1))
        else:
            # Streaming column tiles: keep default double-buffering so weight
            # DMA overlaps the MXU.
            w_spec = pl.BlockSpec((D, col_tile), lambda i, j: (0, j))
            b_spec = pl.BlockSpec((1, col_tile), lambda i, j: (0, j))
        return pl.pallas_call(
            kernel,
            out_shape=jax.ShapeDtypeStruct((N, D_out_p), x.dtype),
            grid_spec=pltpu.PrefetchScalarGridSpec(
                num_scalar_prefetch=0,
                grid=(n_rows, n_cols),
                in_specs=[
                    pl.BlockSpec((rt, D), lambda i, j: (i, 0)),  # x resident over j
                    w_spec,
                    b_spec,
                ],
                out_specs=pl.BlockSpec((rt, col_tile), lambda i, j: (i, j)),
                scratch_shapes=scratch,
            ),
            compiler_params=pltpu.CompilerParams(
                dimension_semantics=("parallel", "arbitrary"),
                vmem_limit_bytes=int(budget),
            ),
            cost_estimate=cost,
        )

    try:
        out2 = build(use_buffered=True)(x2, w_t, b_f)
    except Exception:
        # Fallback for jax builds that reject pipeline_mode=pl.Buffered(1).
        out2 = build(use_buffered=False)(x2, w_t, b_f)

    if D_out_p != D_out:
        out2 = out2[:, :D_out]
    return out2.reshape(B, S, D_out)


def prenorm_reference(x, gamma, beta, w, wb):
    """Pure-JAX reference mirroring torch PreNorm(dim, Linear(dim, dim))."""
    xf = x.astype(jnp.float32)
    mean = jnp.mean(xf, axis=-1, keepdims=True)
    var = jnp.mean((xf - mean) ** 2, axis=-1, keepdims=True)
    y = (xf - mean) * jax.lax.rsqrt(var + LN_EPS) * gamma.astype(jnp.float32) \
        + beta.astype(jnp.float32)
    return y @ w.astype(jnp.float32).T + wb.astype(jnp.float32)


if __name__ == "__main__":
    key = jax.random.PRNGKey(0)
    B, S, D = 2, 8, 32

    kx, kw, kg, kb = jax.random.split(key, 4)
    x = jax.random.normal(kx, (B, S, D), dtype=jnp.float32)

    # nn.LayerNorm default init: weight=1, bias=0
    gamma = jnp.ones((D,), jnp.float32)
    beta = jnp.zeros((D,), jnp.float32)

    # fn = Linear(D, D), deterministic init (torch stores weight as (out, in))
    w = jax.random.normal(kw, (D, D), dtype=jnp.float32) * (1.0 / jnp.sqrt(D))
    wb = jnp.zeros((D,), jnp.float32)

    out = jax.block_until_ready(prenorm_linear(x, gamma, beta, w, wb))
    ref = prenorm_reference(x, gamma, beta, w, wb)
    assert out.shape == (B, S, w.shape[0])
    assert jnp.allclose(out, ref, atol=1e-4, rtol=1e-4), "f32 mismatch vs reference"

    # Non-divisible row count + non-trivial affine: exercises ragged last block.
    B2, S2 = 3, 5
    x2 = jax.random.normal(jax.random.PRNGKey(1), (B2, S2, D), jnp.float32)
    gamma2 = 1.0 + 0.1 * jax.random.normal(kg, (D,), jnp.float32)
    beta2 = 0.1 * jax.random.normal(kb, (D,), jnp.float32)
    out2 = jax.block_until_ready(prenorm_linear(x2, gamma2, beta2, w, wb))
    ref2 = prenorm_reference(x2, gamma2, beta2, w, wb)
    assert out2.shape == (B2, S2, w.shape[0])
    assert jnp.allclose(out2, ref2, atol=1e-4, rtol=1e-4), "ragged-rows mismatch"

    # bf16 path: bf16 MXU matmul with f32 LN stats / f32 accumulation.
    out_bf = jax.block_until_ready(
        prenorm_linear(x.astype(jnp.bfloat16), gamma, beta,
                       w.astype(jnp.bfloat16), wb))
    assert out_bf.shape == (B, S, w.shape[0])
    assert jnp.allclose(out_bf.astype(jnp.float32), ref, atol=1e-1, rtol=1e-1), \
        "bf16 mismatch vs reference"

    # f32 model with bf16 compute dtype (v5e/v7x recommendation): looser tol.
    out_cd = jax.block_until_ready(
        prenorm_linear(x, gamma, beta, w, wb, compute_dtype=jnp.bfloat16))
    assert jnp.allclose(out_cd, ref, atol=1e-1, rtol=1e-1), \
        "bf16-compute mismatch vs reference"

    # Column-streaming path (forced small col_tile): exercises the D_out grid
    # axis, xhat VMEM cache, and one-pass LN statistics.
    D3, DO3 = 256, 256
    k3x, k3w, k3g, k3b = jax.random.split(jax.random.PRNGKey(2), 4)
    x3 = jax.random.normal(k3x, (2, 8, D3), jnp.float32)
    w3 = jax.random.normal(k3w, (DO3, D3), jnp.float32) * (1.0 / jnp.sqrt(D3))
    wb3 = 0.1 * jax.random.normal(k3b, (DO3,), jnp.float32)
    gamma3 = 1.0 + 0.1 * jax.random.normal(k3g, (D3,), jnp.float32)
    beta3 = 0.1 * jax.random.normal(k3b, (D3,), jnp.float32)
    out3 = jax.block_until_ready(
        prenorm_linear(x3, gamma3, beta3, w3, wb3, _force_col_tile=128))
    ref3 = prenorm_reference(x3, gamma3, beta3, w3, wb3)
    assert out3.shape == (2, 8, DO3)
    assert jnp.allclose(out3, ref3, atol=1e-3, rtol=1e-3), "col-tiling mismatch"

    # TODO(synk): PreNorm's arbitrary `fn`/mask kwargs have no generic Pallas
    # equivalent; this kernel fuses the LayerNorm + Linear instantiation.
    print("KERNEL_OK")
</pallas_src>

<mosaic_0001>
module attributes {stable_mosaic.version = 11 : i64} {
  func.func @_prenorm_kernel(%arg0: i32, %arg1: i32, %arg2: memref<16x32xf32, #tpu.memory_space<vmem>>, %arg3: memref<32x128xf32, #tpu.memory_space<vmem>>, %arg4: memref<1x128xf32, #tpu.memory_space<vmem>>, %arg5: memref<16x128xf32, #tpu.memory_space<vmem>>) attributes {dimension_semantics = [#tpu.dimension_semantics<parallel>, #tpu.dimension_semantics<arbitrary>], iteration_bounds = array<i64: 1, 1>, scalar_prefetch = 0 : i64, scratch_operands = 0 : i64, tpu.core_type = #tpu.core_type<tc>, window_params = [{transform_indices = @transform_0, window_bounds = array<i64: 16, 32>}, {pipeline_mode = #tpu.pipeline_mode<synchronous>, transform_indices = @transform_1, window_bounds = array<i64: 32, 128>}, {pipeline_mode = #tpu.pipeline_mode<synchronous>, transform_indices = @transform_2, window_bounds = array<i64: 1, 128>}, {transform_indices = @transform_3, window_bounds = array<i64: 16, 128>}]} {
    %c0 = arith.constant 0 : index
    %c0_0 = arith.constant 0 : index
    %0 = vector.load %arg3[%c0, %c0_0] : memref<32x128xf32, #tpu.memory_space<vmem>>, vector<32x128xf32>
    %c0_1 = arith.constant 0 : index
    %c0_2 = arith.constant 0 : index
    %1 = vector.load %arg2[%c0_1, %c0_2] : memref<16x32xf32, #tpu.memory_space<vmem>>, vector<16x32xf32>
    %cst = arith.constant dense<0.000000e+00> : vector<16xf32>
    %2 = vector.multi_reduction <add>, %1, %cst [1] : vector<16x32xf32> to vector<16xf32>
    %3 = vector.shape_cast %2 : vector<16xf32> to vector<16x1xf32>
    %cst_3 = arith.constant 3.200000e+01 : f32
    %4 = vector.broadcast %cst_3 : f32 to vector<16x1xf32>
    %5 = arith.divf %3, %4 : vector<16x1xf32>
    %6 = vector.broadcast %5 : vector<16x1xf32> to vector<16x32xf32>
    %7 = arith.subf %1, %6 : vector<16x32xf32>
    %8 = arith.mulf %7, %7 : vector<16x32xf32>
    %cst_4 = arith.constant dense<0.000000e+00> : vector<16xf32>
    %9 = vector.multi_reduction <add>, %8, %cst_4 [1] : vector<16x32xf32> to vector<16xf32>
    %10 = vector.shape_cast %9 : vector<16xf32> to vector<16x1xf32>
    %cst_5 = arith.constant 3.200000e+01 : f32
    %11 = vector.broadcast %cst_5 : f32 to vector<16x1xf32>
    %12 = arith.divf %10, %11 : vector<16x1xf32>
    %cst_6 = arith.constant 9.99999974E-6 : f32
    %13 = vector.broadcast %cst_6 : f32 to vector<16x1xf32>
    %14 = arith.addf %12, %13 : vector<16x1xf32>
    %15 = math.rsqrt %14 : vector<16x1xf32>
    %16 = vector.broadcast %15 : vector<16x1xf32> to vector<16x32xf32>
    %17 = arith.mulf %7, %16 : vector<16x32xf32>
    %cst_7 = arith.constant dense<0.000000e+00> : vector<16x128xf32>
    %18 = tpu.matmul %17, %0, %cst_7 {dimension_numbers = #tpu.dot_dimension_numbers<[1], [0], [0], [1], [0, 0, 1, 1], [], []>} : vector<16x32xf32>, vector<32x128xf32>, vector<16x128xf32> -> vector<16x128xf32>
    %c0_8 = arith.constant 0 : index
    %c0_9 = arith.constant 0 : index
    %19 = vector.load %arg4[%c0_8, %c0_9] : memref<1x128xf32, #tpu.memory_space<vmem>>, vector<1x128xf32>
    %20 = vector.broadcast %19 : vector<1x128xf32> to vector<16x128xf32>
    %21 = arith.addf %18, %20 : vector<16x128xf32>
    %c0_10 = arith.constant 0 : index
    %c0_11 = arith.constant 0 : index
    %22 = vector.load %arg5[%c0_10, %c0_11] : memref<16x128xf32, #tpu.memory_space<vmem>>, vector<16x128xf32>
    tpu.vector_store %arg5[%c0_10, %c0_11], %21 {strides = array<i32>} : memref<16x128xf32, #tpu.memory_space<vmem>>, vector<16x128xf32>,
    return
  }
  func.func @transform_0(%arg0: i32, %arg1: i32) -> (i32, i32) {
    %c0_i32 = arith.constant 0 : i32
    %c0_i32_0 = arith.constant 0 : i32
    return %arg0, %c0_i32 : i32, i32
  }
  func.func @transform_1(%arg0: i32, %arg1: i32) -> (i32, i32) {
    %c0_i32 = arith.constant 0 : i32
    %c0_i32_0 = arith.constant 0 : i32
    return %c0_i32, %arg1 : i32, i32
  }
  func.func @transform_2(%arg0: i32, %arg1: i32) -> (i32, i32) {
    %c0_i32 = arith.constant 0 : i32
    %c0_i32_0 = arith.constant 0 : i32
    return %c0_i32, %arg1 : i32, i32
  }
  func.func @transform_3(%arg0: i32, %arg1: i32) -> (i32, i32) {
    %c0_i32 = arith.constant 0 : i32
    return %arg0, %arg1 : i32, i32
  }
}

module attributes {stable_mosaic.version = 11 : i64} {
  func.func @_prenorm_kernel(%arg0: i32, %arg1: i32, %arg2: memref<16x32xf32, #tpu.memory_space<vmem>>, %arg3: memref<32x128xf32, #tpu.memory_space<vmem>>, %arg4: memref<1x128xf32, #tpu.memory_space<vmem>>, %arg5: memref<16x128xf32, #tpu.memory_space<vmem>>) attributes {dimension_semantics = [#tpu.dimension_semantics<parallel>, #tpu.dimension_semantics<arbitrary>], iteration_bounds = array<i64: 1, 1>, scalar_prefetch = 0 : i64, scratch_operands = 0 : i64, tpu.core_type = #tpu.core_type<tc>, window_params = [{transform_indices = @transform_0, window_bounds = array<i64: 16, 32>}, {transform_indices = @transform_1, window_bounds = array<i64: 32, 128>}, {transform_indices = @transform_2, window_bounds = array<i64: 1, 128>}, {transform_indices = @transform_3, window_bounds = array<i64: 16, 128>}]} {
    %c0 = arith.constant 0 : index
    %c0_0 = arith.constant 0 : index
    %0 = vector.load %arg3[%c0, %c0_0] : memref<32x128xf32, #tpu.memory_space<vmem>>, vector<32x128xf32>
    %c0_1 = arith.constant 0 : index
    %c0_2 = arith.constant 0 : index
    %1 = vector.load %arg2[%c0_1, %c0_2] : memref<16x32xf32, #tpu.memory_space<vmem>>, vector<16x32xf32>
    %cst = arith.constant dense<0.000000e+00> : vector<16xf32>
    %2 = vector.multi_reduction <add>, %1, %cst [1] : vector<16x32xf32> to vector<16xf32>
    %3 = vector.shape_cast %2 : vector<16xf32> to vector<16x1xf32>
    %cst_3 = arith.constant 3.200000e+01 : f32
    %4 = vector.broadcast %cst_3 : f32 to vector<16x1xf32>
    %5 = arith.divf %3, %4 : vector<16x1xf32>
    %6 = vector.broadcast %5 : vector<16x1xf32> to vector<16x32xf32>
    %7 = arith.subf %1, %6 : vector<16x32xf32>
    %8 = arith.mulf %7, %7 : vector<16x32xf32>
    %cst_4 = arith.constant dense<0.000000e+00> : vector<16xf32>
    %9 = vector.multi_reduction <add>, %8, %cst_4 [1] : vector<16x32xf32> to vector<16xf32>
    %10 = vector.shape_cast %9 : vector<16xf32> to vector<16x1xf32>
    %cst_5 = arith.constant 3.200000e+01 : f32
    %11 = vector.broadcast %cst_5 : f32 to vector<16x1xf32>
    %12 = arith.divf %10, %11 : vector<16x1xf32>
    %cst_6 = arith.constant 9.99999974E-6 : f32
    %13 = vector.broadcast %cst_6 : f32 to vector<16x1xf32>
    %14 = arith.addf %12, %13 : vector<16x1xf32>
    %15 = math.rsqrt %14 : vector<16x1xf32>
    %16 = vector.broadcast %15 : vector<16x1xf32> to vector<16x32xf32>
    %17 = arith.mulf %7, %16 : vector<16x32xf32>
    %cst_7 = arith.constant dense<0.000000e+00> : vector<16x128xf32>
    %18 = tpu.matmul %17, %0, %cst_7 {dimension_numbers = #tpu.dot_dimension_numbers<[1], [0], [0], [1], [0, 0, 1, 1], [], []>} : vector<16x32xf32>, vector<32x128xf32>, vector<16x128xf32> -> vector<16x128xf32>
    %c0_8 = arith.constant 0 : index
    %c0_9 = arith.constant 0 : index
    %19 = vector.load %arg4[%c0_8, %c0_9] : memref<1x128xf32, #tpu.memory_space<vmem>>, vector<1x128xf32>
    %20 = vector.broadcast %19 : vector<1x128xf32> to vector<16x128xf32>
    %21 = arith.addf %18, %20 : vector<16x128xf32>
    %c0_10 = arith.constant 0 : index
    %c0_11 = arith.constant 0 : index
    %22 = vector.load %arg5[%c0_10, %c0_11] : memref<16x128xf32, #tpu.memory_space<vmem>>, vector<16x128xf32>
    tpu.vector_store %arg5[%c0_10, %c0_11], %21 {strides = array<i32>} : memref<16x128xf32, #tpu.memory_space<vmem>>, vector<16x128xf32>,
    return
  }
  func.func @transform_0(%arg0: i32, %arg1: i32) -> (i32, i32) {
    %c0_i32 = arith.constant 0 : i32
    %c0_i32_0 = arith.constant 0 : i32
    return %arg0, %c0_i32 : i32, i32
  }
  func.func @transform_1(%arg0: i32, %arg1: i32) -> (i32, i32) {
    %c0_i32 = arith.constant 0 : i32
    %c0_i32_0 = arith.constant 0 : i32
    return %c0_i32, %arg1 : i32, i32
  }
  func.func @transform_2(%arg0: i32, %arg1: i32) -> (i32, i32) {
    %c0_i32 = arith.constant 0 : i32
    %c0_i32_0 = arith.constant 0 : i32
    return %c0_i32, %arg1 : i32, i32
  }
  func.func @transform_3(%arg0: i32, %arg1: i32) -> (i32, i32) {
    %c0_i32 = arith.constant 0 : i32
    return %arg0, %arg1 : i32, i32
  }
}

</mosaic_0001>

<bundles_post_ra>
// kernel: tpu_custom_call.1
= control target key start
LH: loop header
LB: loop body
LE: loop exit
PB: predicated region body
PF: predicated region fallthrough
CT: control target
= control target key end

     0   :  { %8 = vsyncpa [#allocation3], 0  ;;  %s332_s0 = inlined_call_operand.hbm [shape: f32[16,32], index: 0, kind: input, shape index: {}]   ;;  %s333_s1 = inlined_call_operand.hbm [shape: f32[32,128], index: 1, kind: input, shape index: {}]   ;;  %s334_s2 = inlined_call_operand.vmem [shape: f32[1,128], index: 2, kind: input, shape index: {}]   ;;  %s335_s3 = inlined_call_operand.hbm [shape: f32[16,128], index: 3, kind: output, shape index: {}]  }
   0x1   :  { %9 = vsyncpa [#allocation6], 0 }
   0x2   :  { %10 = vsyncpa [#allocation4], 0  ;;  %s280_s12 = smov [#allocation2]  }
   0x3   :  { %s16_s13 = sshll.u32 %s280_s12, 4  ;;  %s17_s13 = int_to_ptr.vmem [resolvable:$true] %s16_s13 }
   0x4   :  { %s222_s14 = scalar_lea.vmem %s17_s13, 256  ;;  %p227_p1 = scmp.lt.s32.totalorder %s17_s13, %s17_s13 }
   0x5   :  { %p223_p0 = scmp.ne.s32.totalorder %s17_s13, %s222_s14  ;;  %p228_p2 = scmp.lt.s32.totalorder %s222_s14, %s222_s14 }
   0x7   :  { %p229_p3 = por %p228_p2, %p227_p1 }
   0x9   :  { %p230_p4 = pnand %p229_p3, %p223_p0 }
   0xb   :  { %233 = shalt.err (!%p230_p4)
}
   0xc   :  { %s281_s15 = smov 128   ;;  %s282_s16 = smov 8  }
   0xd   :  { %22 = dma.hbm_to_vmem [thread:$0]  %s332_s0, 256, %s17_s13, [#allocation3], %s281_s15, %s281_s15, %s282_s16  }
   0xe   :  { %s283_s19 = smov [#allocation5]  }
   0xf   :  { %s28_s20 = sshll.u32 %s283_s19, 4  ;;  %s29_s20 = int_to_ptr.vmem [resolvable:$true] %s28_s20 }
  0x10   :  { %s242_s21 = scalar_lea.vmem %s29_s20, 512  ;;  %p247_p6 = scmp.lt.s32.totalorder %s29_s20, %s29_s20 }
  0x11   :  { %p243_p5 = scmp.ne.s32.totalorder %s29_s20, %s242_s21  ;;  %p248_p7 = scmp.lt.s32.totalorder %s242_s21, %s242_s21 }
  0x13   :  { %p249_p8 = por %p248_p7, %p247_p6 }
  0x15   :  { %p250_p9 = pnand %p249_p8, %p243_p5 }
  0x17   :  { %253 = shalt.err (!%p250_p9)
}
  0x18   :  { %34 = dma.hbm_to_vmem [thread:$0]  %s333_s1, 512, %s29_s20, [#allocation6], %s281_s15, %s281_s15, %s282_s16  }
  0x19   :  { %274 = dma.done.wait [#allocation3], 256  }
  0x1a   :  { %275 = vsyncadd [#allocation3], 4294967040 }
  0x1b   :  { %276 = dma.done.wait [#allocation6], 512  }
  0x1c   :  { %277 = vsyncadd [#allocation6], 4294966784  ;;  %vm49_vm0 = vcmask 261120   ;;  %v47_v0 = vld [vmem:[#allocation2] sm:$0xff]  ;;  %v48_v1 = vld [vmem:[#allocation2 + $0x8] sm:$0xff]  ;;  %s284_s24 = smov [#allocation7]  }
  0x1d   :  { %v50_v2 = vsel %vm49_vm0, %v47_v0, 0.0  ;;  %v53_v3 = vsel %vm49_vm0, %v48_v1, 0.0  ;;  %v46_v14 = vld [vmem:[#allocation5 + $0x18] sm:$0xff]  ;;  %v45_v15 = vld [vmem:[#allocation5 + $0x10] sm:$0xff]  ;;  %v44_v16 = vld [vmem:[#allocation5 + $0x8] sm:$0xff]  ;;  %s172_s25 = sshll.u32 %s284_s24, 4  ;;  %s173_s25 = int_to_ptr.vmem [resolvable:$true] %s172_s25 }
  0x1e   :  { %51 = vadd.xlane.f32.xlu0 %v50_v2  ;;  %194 = vmatprep.subr.mxu0 %v46_v14  ;;  %v43_v17 = vld [vmem:[#allocation5] sm:$0xff]  ;;  %v185_v28 = vld [vmem:[%s334_s2] ss:$0 sm:$0xff]  ;;  %s254_s26 = scalar_lea.vmem %s173_s25, 256  ;;  %p259_p11 = scmp.lt.s32.totalorder %s173_s25, %s173_s25 }
  0x1f   :  { %195 = vmatpush3.msra.mxu0 %v46_v14  ;;  %p255_p10 = scmp.ne.s32.totalorder %s173_s25, %s254_s26  ;;  %p260_p12 = scmp.lt.s32.totalorder %s254_s26, %s254_s26 }
  0x20   :  { %196 = vmatprep.subr.mxu0 %v45_v15 }
  0x21   :  { %197 = vmatpush3.msra.mxu0 %v45_v15  ;;  %p261_p13 = por %p260_p12, %p259_p11 }
  0x22   :  { %54 = vadd.xlane.f32.xlu0 %v53_v3  ;;  %198 = vmatprep.subr.mxu0 %v44_v16 }
  0x23   :  { %199 = vmatpush3.msra.mxu0 %v44_v16  ;;  %p262_p0 = pnand %p261_p13, %p255_p10 }
  0x24   :  { %200 = vmatprep.subr.mxu0 %v43_v17 }
  0x25   :  { %201 = vmatpush3.msra.mxu0 %v43_v17 }
  0xa7   :  { %v52_v4 = vpop.xlane.xlu0 %51 }
  0xa8   :  { %v57_v5 = vmul.f32 0.03125, %v52_v4 }
  0xaa   :  { %v59_v6 = vsub.f32 %v47_v0, %v57_v5 }
  0xab   :  { %v55_v7 = vpop.xlane.xlu0 %54 }
  0xac   :  { %v58_v8 = vmul.f32 0.03125, %v55_v7  ;;  %v61_v9 = vmul.f32 %v59_v6, %v59_v6 }
  0xae   :  { %v60_v10 = vsub.f32 %v48_v1, %v58_v8  ;;  %v63_v11 = vsel %vm49_vm0, %v61_v9, 0.0 }
  0xaf   :  { %64 = vadd.xlane.f32.xlu1 %v63_v11 }
  0xb0   :  { %v62_v12 = vmul.f32 %v60_v10, %v60_v10 }
  0xb2   :  { %v66_v13 = vsel %vm49_vm0, %v62_v12, 0.0 }
  0xb3   :  { %67 = vadd.xlane.f32.xlu1 %v66_v13 }
 0x138   :  { %v65_v18 = vpop.xlane.xlu1 %64 }
 0x139   :  { %v69_v19 = vmul.f32 0.03125, %v65_v18 }
 0x13b   :  { %v71_v20 = vadd.f32 1e-05, %v69_v19 }
 0x13c   :  { %v68_v21 = vpop.xlane.xlu1 %67 }
 0x13d   :  { %210 = vrsqrt.f32 %v71_v20  ;;  %v70_v22 = vmul.f32 0.03125, %v68_v21 }
 0x13f   :  { %v72_v23 = vadd.f32 1e-05, %v70_v22 }
 0x141   :  { %212 = vrsqrt.f32 %v72_v23 }
 0x14a   :  { %v211_v24 = vpop.eup %210 }
 0x14b   :  { %v75_v25 = vmul.f32 %v211_v24, %v59_v6 }
 0x14d   :  { %202 = vmatprep.mubr.msk.f32.mxu0 %vm49_vm0, %v75_v25 }
 0x14e   :  { %v213_v26 = vpop.eup %212 }
 0x14f   :  { %v76_v27 = vmul.f32 %v213_v26, %v60_v10 }
 0x151   :  { %203 = vmatmul.mubr.msk.f32.vlgmr.msra.gmra.mxu0 %vm49_vm0, %v76_v27 }
 0x211   :  { %v204_v29 = vpop.f32.mrf.mxu0 }
 0x212   :  { %v162_v30 = vadd.f32 %v204_v29, %v185_v28 }
 0x213   :  { %v156_v31 = vpop.f32.mrf.mxu0 }
 0x214   :  { %166 = vst [vmem:[#allocation7 + $0x8] sm:$0xff] %v162_v30  ;;  %v157_v32 = vadd.f32 %v185_v28, %v156_v31 }
 0x216   :  { %165 = vst [vmem:[#allocation7] sm:$0xff] %v157_v32 }
 0x217   :  { %265 = shalt.err (!%p262_p0)
}
 0x218   :  { %178 = dma.vmem_to_hbm [thread:$0]  %s173_s25, 256, %s335_s3, [#allocation4], %s281_s15, %s281_s15, %s282_s16  }
 0x219   :  { %278 = dma.done.wait [#allocation4], 256  }
 0x21a   :  { %279 = vsyncadd [#allocation4], 4294967040 }
 0x21b   :  { %182 = vsyncpa [#allocation3], 1 }
 0x21c   :  { %183 = vsyncpa [#allocation6], 1 }
 0x21d   :  { %184 = vsyncpa [#allocation4], 1 }

// kernel: tpu_custom_call.1
= control target key start
LH: loop header
LB: loop body
LE: loop exit
PB: predicated region body
PF: predicated region fallthrough
CT: control target
= control target key end

     0   :  { %8 = vsyncpa [#allocation3], 0  ;;  %s332_s0 = inlined_call_operand.hbm [shape: f32[16,32], index: 0, kind: input, shape index: {}]   ;;  %s333_s1 = inlined_call_operand.hbm [shape: f32[32,128], index: 1, kind: input, shape index: {}]   ;;  %s334_s2 = inlined_call_operand.vmem [shape: f32[1,128], index: 2, kind: input, shape index: {}]   ;;  %s335_s3 = inlined_call_operand.hbm [shape: f32[16,128], index: 3, kind: output, shape index: {}]  }
   0x1   :  { %9 = vsyncpa [#allocation6], 0 }
   0x2   :  { %10 = vsyncpa [#allocation4], 0  ;;  %s280_s12 = smov [#allocation2]  }
   0x3   :  { %s16_s13 = sshll.u32 %s280_s12, 4  ;;  %s17_s13 = int_to_ptr.vmem [resolvable:$true] %s16_s13 }
   0x4   :  { %s222_s14 = scalar_lea.vmem %s17_s13, 256  ;;  %p227_p1 = scmp.lt.s32.totalorder %s17_s13, %s17_s13 }
   0x5   :  { %p223_p0 = scmp.ne.s32.totalorder %s17_s13, %s222_s14  ;;  %p228_p2 = scmp.lt.s32.totalorder %s222_s14, %s222_s14 }
   0x7   :  { %p229_p3 = por %p228_p2, %p227_p1 }
   0x9   :  { %p230_p4 = pnand %p229_p3, %p223_p0 }
   0xb   :  { %233 = shalt.err (!%p230_p4)
}
   0xc   :  { %s281_s15 = smov 128   ;;  %s282_s16 = smov 8  }
   0xd   :  { %22 = dma.hbm_to_vmem [thread:$0]  %s332_s0, 256, %s17_s13, [#allocation3], %s281_s15, %s281_s15, %s282_s16  }
   0xe   :  { %s283_s19 = smov [#allocation5]  }
   0xf   :  { %s28_s20 = sshll.u32 %s283_s19, 4  ;;  %s29_s20 = int_to_ptr.vmem [resolvable:$true] %s28_s20 }
  0x10   :  { %s242_s21 = scalar_lea.vmem %s29_s20, 512  ;;  %p247_p6 = scmp.lt.s32.totalorder %s29_s20, %s29_s20 }
  0x11   :  { %p243_p5 = scmp.ne.s32.totalorder %s29_s20, %s242_s21  ;;  %p248_p7 = scmp.lt.s32.totalorder %s242_s21, %s242_s21 }
  0x13   :  { %p249_p8 = por %p248_p7, %p247_p6 }
  0x15   :  { %p250_p9 = pnand %p249_p8, %p243_p5 }
  0x17   :  { %253 = shalt.err (!%p250_p9)
}
  0x18   :  { %34 = dma.hbm_to_vmem [thread:$0]  %s333_s1, 512, %s29_s20, [#allocation6], %s281_s15, %s281_s15, %s282_s16  }
  0x19   :  { %274 = dma.done.wait [#allocation3], 256  }
  0x1a   :  { %275 = vsyncadd [#allocation3], 4294967040 }
  0x1b   :  { %276 = dma.done.wait [#allocation6], 512  }
  0x1c   :  { %277 = vsyncadd [#allocation6], 4294966784  ;;  %vm49_vm0 = vcmask 261120   ;;  %v47_v0 = vld [vmem:[#allocation2] sm:$0xff]  ;;  %v48_v1 = vld [vmem:[#allocation2 + $0x8] sm:$0xff]  ;;  %s284_s24 = smov [#allocation7]  }
  0x1d   :  { %v50_v2 = vsel %vm49_vm0, %v47_v0, 0.0  ;;  %v53_v3 = vsel %vm49_vm0, %v48_v1, 0.0  ;;  %v46_v14 = vld [vmem:[#allocation5 + $0x18] sm:$0xff]  ;;  %v45_v15 = vld [vmem:[#allocation5 + $0x10] sm:$0xff]  ;;  %v44_v16 = vld [vmem:[#allocation5 + $0x8] sm:$0xff]  ;;  %s172_s25 = sshll.u32 %s284_s24, 4  ;;  %s173_s25 = int_to_ptr.vmem [resolvable:$true] %s172_s25 }
  0x1e   :  { %51 = vadd.xlane.f32.xlu0 %v50_v2  ;;  %194 = vmatprep.subr.mxu0 %v46_v14  ;;  %v43_v17 = vld [vmem:[#allocation5] sm:$0xff]  ;;  %v185_v28 = vld [vmem:[%s334_s2] ss:$0 sm:$0xff]  ;;  %s254_s26 = scalar_lea.vmem %s173_s25, 256  ;;  %p259_p11 = scmp.lt.s32.totalorder %s173_s25, %s173_s25 }
  0x1f   :  { %195 = vmatpush3.msra.mxu0 %v46_v14  ;;  %p255_p10 = scmp.ne.s32.totalorder %s173_s25, %s254_s26  ;;  %p260_p12 = scmp.lt.s32.totalorder %s254_s26, %s254_s26 }
  0x20   :  { %196 = vmatprep.subr.mxu0 %v45_v15 }
  0x21   :  { %197 = vmatpush3.msra.mxu0 %v45_v15  ;;  %p261_p13 = por %p260_p12, %p259_p11 }
  0x22   :  { %54 = vadd.xlane.f32.xlu0 %v53_v3  ;;  %198 = vmatprep.subr.mxu0 %v44_v16 }
  0x23   :  { %199 = vmatpush3.msra.mxu0 %v44_v16  ;;  %p262_p0 = pnand %p261_p13, %p255_p10 }
  0x24   :  { %200 = vmatprep.subr.mxu0 %v43_v17 }
  0x25   :  { %201 = vmatpush3.msra.mxu0 %v43_v17 }
  0xa7   :  { %v52_v4 = vpop.xlane.xlu0 %51 }
  0xa8   :  { %v57_v5 = vmul.f32 0.03125, %v52_v4 }
  0xaa   :  { %v59_v6 = vsub.f32 %v47_v0, %v57_v5 }
  0xab   :  { %v55_v7 = vpop.xlane.xlu0 %54 }
  0xac   :  { %v58_v8 = vmul.f32 0.03125, %v55_v7  ;;  %v61_v9 = vmul.f32 %v59_v6, %v59_v6 }
  0xae   :  { %v60_v10 = vsub.f32 %v48_v1, %v58_v8  ;;  %v63_v11 = vsel %vm49_vm0, %v61_v9, 0.0 }
  0xaf   :  { %64 = vadd.xlane.f32.xlu1 %v63_v11 }
  0xb0   :  { %v62_v12 = vmul.f32 %v60_v10, %v60_v10 }
  0xb2   :  { %v66_v13 = vsel %vm49_vm0, %v62_v12, 0.0 }
  0xb3   :  { %67 = vadd.xlane.f32.xlu1 %v66_v13 }
 0x138   :  { %v65_v18 = vpop.xlane.xlu1 %64 }
 0x139   :  { %v69_v19 = vmul.f32 0.03125, %v65_v18 }
 0x13b   :  { %v71_v20 = vadd.f32 1e-05, %v69_v19 }
 0x13c   :  { %v68_v21 = vpop.xlane.xlu1 %67 }
 0x13d   :  { %210 = vrsqrt.f32 %v71_v20  ;;  %v70_v22 = vmul.f32 0.03125, %v68_v21 }
 0x13f   :  { %v72_v23 = vadd.f32 1e-05, %v70_v22 }
 0x141   :  { %212 = vrsqrt.f32 %v72_v23 }
 0x14a   :  { %v211_v24 = vpop.eup %210 }
 0x14b   :  { %v75_v25 = vmul.f32 %v211_v24, %v59_v6 }
 0x14d   :  { %202 = vmatprep.mubr.msk.f32.mxu0 %vm49_vm0, %v75_v25 }
 0x14e   :  { %v213_v26 = vpop.eup %212 }
 0x14f   :  { %v76_v27 = vmul.f32 %v213_v26, %v60_v10 }
 0x151   :  { %203 = vmatmul.mubr.msk.f32.vlgmr.msra.gmra.mxu0 %vm49_vm0, %v76_v27 }
 0x211   :  { %v204_v29 = vpop.f32.mrf.mxu0 }
 0x212   :  { %v162_v30 = vadd.f32 %v204_v29, %v185_v28 }
 0x213   :  { %v156_v31 = vpop.f32.mrf.mxu0 }
 0x214   :  { %166 = vst [vmem:[#allocation7 + $0x8] sm:$0xff] %v162_v30  ;;  %v157_v32 = vadd.f32 %v185_v28, %v156_v31 }
 0x216   :  { %165 = vst [vmem:[#allocation7] sm:$0xff] %v157_v32 }
 0x217   :  { %265 = shalt.err (!%p262_p0)
}
 0x218   :  { %178 = dma.vmem_to_hbm [thread:$0]  %s173_s25, 256, %s335_s3, [#allocation4], %s281_s15, %s281_s15, %s282_s16  }
 0x219   :  { %278 = dma.done.wait [#allocation4], 256  }
 0x21a   :  { %279 = vsyncadd [#allocation4], 4294967040 }
 0x21b   :  { %182 = vsyncpa [#allocation3], 1 }
 0x21c   :  { %183 = vsyncpa [#allocation6], 1 }
 0x21d   :  { %184 = vsyncpa [#allocation4], 1 }

</bundles_post_ra>
